<compile_context>
chip_gen: v6e
topology: v6e:2x2x1
jax: 0.10.0
libtpu: 0.0.40
codegen_flags: <defaults>
</compile_context>

<pallas_src>
from functools import partial

import jax
import jax.numpy as jnp
from jax import lax
from jax.experimental import pallas as pl
from jax.experimental.pallas import tpu as pltpu

_LANE = 128
_SUBLANE = 8


def _round_up(x, m):
    return ((x + m - 1) // m) * m


def _vmem_budget_bytes():
    """(tile budget, vmem_limit_bytes) adapted to the chip's physical VMEM."""
    cap = 64 * 1024 * 1024  # conservative default (v7x per-TC VMEM)
    try:
        info = pltpu.get_tpu_info()
        cap = int(getattr(info, "vmem_capacity_bytes", cap))
    except Exception:
        pass
    if cap <= 64 * 1024 * 1024:
        # v7x-class part: 64 MiB VMEM per TensorCore.
        return 40 * 1024 * 1024, 48 * 1024 * 1024
    # v5e / v6e: 128 MiB physical VMEM (scoped default is far below that).
    return 96 * 1024 * 1024, 110 * 1024 * 1024


def _plan_tiles(B, K, N, in_itemsize, out_itemsize, budget):
    """Choose (tb, grid_b, tn, grid_n) so the working set fits the VMEM budget."""
    k_pad = _round_up(K, _LANE)
    n_pad = _round_up(N, _SUBLANE)

    # Resident weight (constant index map -> fetched once, NOT double-buffered).
    w_resident = n_pad * k_pad * in_itemsize
    if w_resident <= budget // 2:
        tn, grid_n = N, 1
        w_foot = w_resident
    else:
        # Large classifier head: tile the class axis (lane-dense multiple of 128).
        tn = 4 * _LANE
        while tn > _LANE and 2 * tn * k_pad * in_itemsize > budget // 2:
            tn -= _LANE
        grid_n = -(-N // tn)
        w_foot = 2 * tn * k_pad * in_itemsize  # double-buffered once tiled

    rem = max(budget - w_foot, 0)
    per_row = 2 * (k_pad * in_itemsize + _round_up(tn, _LANE) * out_itemsize)
    max_tb = max(_SUBLANE, min(1024, (rem // max(per_row, 1)) // _SUBLANE * _SUBLANE))

    if B <= max_tb:
        tb, grid_b = B, 1                     # block == full batch dim (always legal)
    else:
        grid_b = -(-B // max_tb)
        tb = _round_up(-(-B // grid_b), _SUBLANE)   # balanced tiles, multiple of 8
    return tb, grid_b, tn, grid_n


def _classifier_kernel(x_ref, w_ref, b_ref, o_ref, *, precision):
    # deltaV = x @ W^T : contract in_features (dim 1 of both operands) on the MXU;
    # the wrapper never materializes a transposed or padded weight copy in HBM.
    delta_v = lax.dot_general(
        x_ref[...],
        w_ref[...],
        dimension_numbers=(((1,), (1,)), ((), ())),
        preferred_element_type=jnp.float32,
        precision=precision,
    )
    # Threshold is pre-folded into the bias (b' = bias - threshold).
    # LIF step 1 with zero state: spike = (deltaV + b' > 0).float()
    o_ref[...] = (delta_v + b_ref[...] > 0.0).astype(o_ref.dtype)


@partial(jax.jit, static_argnames=("compute_dtype",))
def classifier_forward(x, weight, bias, threshold=1.0, decay=1.0, *,
                       compute_dtype=jnp.bfloat16):
    """x: [B, in_features], weight: [n_class, in_features] (PyTorch layout), bias: [n_class]."""
    del decay  # multiplies a zero membrane potential on the first step, drops out
    B, K = x.shape
    N = weight.shape[0]

    compute_dtype = jnp.dtype(compute_dtype)
    in_itemsize = compute_dtype.itemsize
    out_itemsize = 4  # f32 spike output (0.0 / 1.0), written at exact (B, N) size

    budget, vmem_limit = _vmem_budget_bytes()
    tb, grid_b, tn, grid_n = _plan_tiles(B, K, N, in_itemsize, out_itemsize, budget)

    # Cheap per-call prep (fuses / constant-folds under jit; hoist for repeated steps).
    x_c = x.astype(compute_dtype)
    w_c = weight.astype(compute_dtype)
    b_eff = (bias.astype(jnp.float32)
             - jnp.asarray(threshold, dtype=jnp.float32)).reshape(1, N)

    precision = (lax.Precision.HIGHEST
                 if compute_dtype == jnp.dtype(jnp.float32)
                 else lax.Precision.DEFAULT)

    cost = pl.CostEstimate(
        flops=2 * B * K * N,
        transcendentals=0,
        bytes_accessed=(B * K * in_itemsize
                        + (grid_b if grid_n > 1 else 1) * N * K * in_itemsize
                        + N * 4
                        + B * N * out_itemsize),
    )

    out = pl.pallas_call(
        partial(_classifier_kernel, precision=precision),
        out_shape=jax.ShapeDtypeStruct((B, N), jnp.float32),
        grid=(grid_b, grid_n),
        in_specs=[
            pl.BlockSpec((tb, K), lambda i, j: (i, 0)),   # x: tiled over batch only
            pl.BlockSpec((tn, K), lambda i, j: (j, 0)),   # W: resident (or class-tiled)
            pl.BlockSpec((1, tn), lambda i, j: (0, j)),   # bias' = bias - threshold
        ],
        out_specs=pl.BlockSpec((tb, tn), lambda i, j: (i, j)),
        compiler_params=pltpu.CompilerParams(
            dimension_semantics=("parallel", "arbitrary"),
            vmem_limit_bytes=vmem_limit,
        ),
        cost_estimate=cost,
    )(x_c, w_c, b_eff)

    return out


if __name__ == "__main__":
    key = jax.random.PRNGKey(0)

    def run_case(B, in_features, n_class, threshold=1.0, decay=1.0,
                 compute_dtype=jnp.float32, seed=0):
        kx, kw, kb = jax.random.split(jax.random.fold_in(key, seed), 3)
        x = jax.random.normal(kx, (B, in_features), dtype=jnp.float32)
        bound = 1.0 / (in_features ** 0.5)
        weight = jax.random.uniform(
            kw, (n_class, in_features), minval=-bound, maxval=bound, dtype=jnp.float32
        )
        bias = jax.random.uniform(
            kb, (n_class,), minval=-bound, maxval=bound, dtype=jnp.float32
        )

        spikes = classifier_forward(x, weight, bias, threshold=threshold, decay=decay,
                                    compute_dtype=compute_dtype)
        spikes = jax.block_until_ready(spikes)
        assert spikes.shape == (B, n_class)
        assert spikes.dtype == jnp.float32

        # f32 reference; only compare elements whose pre-activation is clearly away
        # from the threshold so reduced-precision compute cannot flake the check.
        delta = x @ weight.T + bias - threshold
        ref = (delta > 0.0).astype(jnp.float32)
        margin = 1e-3 if compute_dtype == jnp.float32 else 5e-2
        decided = jnp.abs(delta) > margin
        ok = bool(jnp.all(jnp.where(decided, spikes == ref, True)))
        assert ok, f"mismatch vs reference for shape {(B, in_features, n_class)}"

    # Small deterministic cases; the second exercises non-aligned B / n_class
    # (partial edge blocks), the third exercises the bf16 compute path.
    run_case(B=8, in_features=32, n_class=16, compute_dtype=jnp.float32, seed=0)
    run_case(B=20, in_features=48, n_class=10, compute_dtype=jnp.float32, seed=1)
    run_case(B=20, in_features=48, n_class=10, compute_dtype=jnp.bfloat16, seed=2)

    print("KERNEL_OK")
</pallas_src>

<mosaic_0001>
module attributes {stable_mosaic.version = 11 : i64} {
  func.func @_classifier_kernel(%arg0: i32, %arg1: i32, %arg2: memref<8x32xf32, #tpu.memory_space<vmem>>, %arg3: memref<16x32xf32, #tpu.memory_space<vmem>>, %arg4: memref<1x16xf32, #tpu.memory_space<vmem>>, %arg5: memref<8x16xf32, #tpu.memory_space<vmem>>) attributes {dimension_semantics = [#tpu.dimension_semantics<parallel>, #tpu.dimension_semantics<arbitrary>], iteration_bounds = array<i64: 1, 1>, scalar_prefetch = 0 : i64, scratch_operands = 0 : i64, tpu.core_type = #tpu.core_type<tc>, window_params = [{transform_indices = @transform_0, window_bounds = array<i64: 8, 32>}, {transform_indices = @transform_1, window_bounds = array<i64: 16, 32>}, {transform_indices = @transform_2, window_bounds = array<i64: 1, 16>}, {transform_indices = @transform_3, window_bounds = array<i64: 8, 16>}]} {
    %c0 = arith.constant 0 : index
    %c0_0 = arith.constant 0 : index
    %0 = vector.load %arg2[%c0, %c0_0] : memref<8x32xf32, #tpu.memory_space<vmem>>, vector<8x32xf32>
    %c0_1 = arith.constant 0 : index
    %c0_2 = arith.constant 0 : index
    %1 = vector.load %arg3[%c0_1, %c0_2] : memref<16x32xf32, #tpu.memory_space<vmem>>, vector<16x32xf32>
    %cst = arith.constant dense<0.000000e+00> : vector<8x16xf32>
    %2 = tpu.matmul %0, %1, %cst {dimension_numbers = #tpu.dot_dimension_numbers<[1], [1], [0], [0], [0, 0, 1, 0], [], []>, precision = #tpu.contract_precision<fp32>} : vector<8x32xf32>, vector<16x32xf32>, vector<8x16xf32> -> vector<8x16xf32>
    %c0_3 = arith.constant 0 : index
    %c0_4 = arith.constant 0 : index
    %3 = vector.load %arg4[%c0_3, %c0_4] : memref<1x16xf32, #tpu.memory_space<vmem>>, vector<1x16xf32>
    %4 = vector.broadcast %3 : vector<1x16xf32> to vector<8x16xf32>
    %5 = arith.addf %2, %4 : vector<8x16xf32>
    %cst_5 = arith.constant 0.000000e+00 : f32
    %6 = vector.broadcast %cst_5 : f32 to vector<8x16xf32>
    %7 = arith.cmpf ogt, %5, %6 : vector<8x16xf32>
    %8 = arith.extui %7 : vector<8x16xi1> to vector<8x16xi32>
    %9 = arith.sitofp %8 : vector<8x16xi32> to vector<8x16xf32>
    %c0_6 = arith.constant 0 : index
    %c0_7 = arith.constant 0 : index
    %10 = vector.load %arg5[%c0_6, %c0_7] : memref<8x16xf32, #tpu.memory_space<vmem>>, vector<8x16xf32>
    tpu.vector_store %arg5[%c0_6, %c0_7], %9 {strides = array<i32>} : memref<8x16xf32, #tpu.memory_space<vmem>>, vector<8x16xf32>,
    return
  }
  func.func @transform_0(%arg0: i32, %arg1: i32) -> (i32, i32) {
    %c0_i32 = arith.constant 0 : i32
    %c0_i32_0 = arith.constant 0 : i32
    return %arg0, %c0_i32 : i32, i32
  }
  func.func @transform_1(%arg0: i32, %arg1: i32) -> (i32, i32) {
    %c0_i32 = arith.constant 0 : i32
    %c0_i32_0 = arith.constant 0 : i32
    return %arg1, %c0_i32 : i32, i32
  }
  func.func @transform_2(%arg0: i32, %arg1: i32) -> (i32, i32) {
    %c0_i32 = arith.constant 0 : i32
    %c0_i32_0 = arith.constant 0 : i32
    return %c0_i32, %arg1 : i32, i32
  }
  func.func @transform_3(%arg0: i32, %arg1: i32) -> (i32, i32) {
    %c0_i32 = arith.constant 0 : i32
    return %arg0, %arg1 : i32, i32
  }
}

</mosaic_0001>

<bundles_post_ra>
// kernel: classifier_forward.1
= control target key start
LH: loop header
LB: loop body
LE: loop exit
PB: predicated region body
PF: predicated region fallthrough
CT: control target
= control target key end

     0   :  { %8 = vsyncpa [#allocation3], 0  ;;  %s740_s0 = inlined_call_operand.hbm [shape: f32[8,32], index: 0, kind: input, shape index: {}]   ;;  %s741_s1 = inlined_call_operand.hbm [shape: f32[16,32], index: 1, kind: input, shape index: {}]   ;;  %s742_s2 = inlined_call_operand.vmem [shape: f32[1,16], index: 2, kind: input, shape index: {}]   ;;  %s743_s3 = inlined_call_operand.hbm [shape: f32[8,16], index: 3, kind: output, shape index: {}]  }
   0x1   :  { %9 = vsyncpa [#allocation6], 0 }
   0x2   :  { %10 = vsyncpa [#allocation4], 0  ;;  %s676_s12 = smov [#allocation2]   ;;  %s677_s14 = smov [#allocation5]  }
   0x3   :  { %s17_s13 = sshll.u32 %s676_s12, 4  ;;  %s26_s15 = sshll.u32 %s677_s14, 4  ;;  %s18_s13 = int_to_ptr.vmem [resolvable:$true] %s17_s13  ;;  %s27_s15 = int_to_ptr.vmem [resolvable:$true] %s26_s15 }
   0x4   :  { %s618_s16 = scalar_lea.vmem %s18_s13, 128  ;;  %p623_p1 = scmp.lt.s32.totalorder %s18_s13, %s18_s13 }
   0x5   :  { %p619_p0 = scmp.ne.s32.totalorder %s18_s13, %s618_s16  ;;  %p624_p2 = scmp.lt.s32.totalorder %s618_s16, %s618_s16 }
   0x7   :  { %p625_p3 = por %p624_p2, %p623_p1 }
   0x9   :  { %p626_p4 = pnand %p625_p3, %p619_p0 }
   0xb   :  { %629 = shalt.err (!%p626_p4)
}
   0xc   :  { %20 = dma.hbm_to_vmem [thread:$0]  %s740_s0, 128, %s18_s13, [#allocation3]  }
   0xd   :  { %s638_s19 = scalar_lea.vmem %s27_s15, 256  ;;  %p643_p6 = scmp.lt.s32.totalorder %s27_s15, %s27_s15 }
   0xe   :  { %p639_p5 = scmp.ne.s32.totalorder %s27_s15, %s638_s19  ;;  %p644_p7 = scmp.lt.s32.totalorder %s638_s19, %s638_s19 }
  0x10   :  { %p645_p8 = por %p644_p7, %p643_p6 }
  0x12   :  { %p646_p9 = pnand %p645_p8, %p639_p5 }
  0x14   :  { %649 = shalt.err (!%p646_p9)
}
  0x15   :  { %s678_s20 = smov 128   ;;  %s679_s21 = smov 8  }
  0x16   :  { %32 = dma.hbm_to_vmem [thread:$0]  %s741_s1, 256, %s27_s15, [#allocation6], %s678_s20, %s678_s20, %s679_s21  }
  0x17   :  { %670 = dma.done.wait [#allocation3], 128  }
  0x18   :  { %671 = vsyncadd [#allocation3], 4294967168 }
  0x19   :  { %672 = dma.done.wait [#allocation6], 256  }
  0x1a   :  { %673 = vsyncadd [#allocation6], 4294967040  ;;  %v680_v0 = vmov 0.0   ;;  %vm681_vm0 = vmmov 0   ;;  %vm51_vm1 = vcmask 261120   ;;  %v43_v1 = vld [vmem:[#allocation5 + $0x8] sm:$0xff] }
  0x1b   :  { %561 = vmatprep.subr.mxu0 %v680_v0  ;;  %568 = vmatprep.subr.mxu1 %v680_v0  ;;  %v42_v2 = vld [vmem:[#allocation5] sm:$0xff]  ;;  %v41_v3 = vld [vmem:[#allocation2] sm:$0xff]  ;;  %v59_v4 = vsel %vm51_vm1, %v43_v1, 0  ;;  %s682_s24 = smov [#allocation7]   ;;  %vm523_vm2 = vcmask 130048  }
  0x1c   :  { %565 = vmatprep.mubr.msk.f32.mxu0 %vm681_vm0, %v680_v0  ;;  %572 = vmatprep.mubr.msk.f32.mxu1 %vm681_vm0, %v680_v0  ;;  %v56_v5 = vsel %vm51_vm1, %v42_v2, 0  ;;  %v53_v6 = vsel %vm51_vm1, %v41_v3, 0  ;;  %v90_v7 = vand.u32 4294901760, %v59_v4  ;;  %v541_v24 = vld [vmem:[%s742_s2] ss:$0 sm:$0xff]  ;;  %s531_s25 = sshll.u32 %s682_s24, 4  ;;  %s532_s25 = int_to_ptr.vmem [resolvable:$true] %s531_s25 }
  0x1d   :  { %v93_v8 = vand.u32 4294901760, %v56_v5  ;;  %v128_v9 = vand.u32 4294901760, %v53_v6  ;;  %s650_s2 = scalar_lea.vmem %s532_s25, 128  ;;  %p655_p11 = scmp.lt.s32.totalorder %s532_s25, %s532_s25 }
  0x1e   :  { %562 = vmatpush3.xpose.msra.mxu0 %v90_v7  ;;  %v168_v10 = vsub.f32 %v59_v4, %v90_v7  ;;  %p651_p10 = scmp.ne.s32.totalorder %s532_s25, %s650_s2  ;;  %p656_p12 = scmp.lt.s32.totalorder %s650_s2, %s650_s2 }
  0x1f   :  { %v129_v11 = vsub.f32 %v53_v6, %v128_v9  ;;  %v175_v12 = vsub.f32 %v56_v5, %v93_v8  ;;  %563 = vmatprep.subr.mxu0 %v680_v0 }
  0x20   :  { %v169_v13 = vand.u32 4294901760, %v168_v10  ;;  %p657_p13 = por %p656_p12, %p655_p11 }
  0x21   :  { %v130_v14 = vand.u32 4294901760, %v129_v11  ;;  %v176_v15 = vand.u32 4294901760, %v175_v12 }
  0x22   :  { %564 = vmatpush3.xpose.msra.mxu0 %v93_v8  ;;  %v170_v16 = vsub.f32 %v168_v10, %v169_v13  ;;  %p658_p0 = pnand %p657_p13, %p651_p10 }
  0x23   :  { %v131_v17 = vsub.f32 %v129_v11, %v130_v14  ;;  %v177_v18 = vsub.f32 %v175_v12, %v176_v15  ;;  %575 = vmatprep.subr.mxu0 %v680_v0 }
  0x24   :  { %v171_v19 = vand.u32 4294901760, %v170_v16 }
  0x25   :  { %v132_v20 = vand.u32 4294901760, %v131_v17  ;;  %v178_v21 = vand.u32 4294901760, %v177_v18 }
  0x26   :  { %569 = vmatpush3.xpose.msra.mxu1 %v171_v19 }
  0x27   :  { %566 = vmatmul.mubr.f32.vlgmr.msra.gmra.mxu0 %v132_v20  ;;  %570 = vmatprep.subr.mxu1 %v680_v0 }
  0x28   :  { %576 = vmatpush3.xpose.msra.mxu0 %v168_v10  ;;  %579 = vmatprep.mubr.msk.f32.mxu0 %vm681_vm0, %v680_v0 }
  0x29   :  { %577 = vmatprep.subr.mxu0 %v680_v0 }
  0x2a   :  { %571 = vmatpush3.xpose.msra.mxu1 %v178_v21 }
  0x2b   :  { %582 = vmatprep.subr.mxu1 %v680_v0 }
  0x2c   :  { %578 = vmatpush3.xpose.msra.mxu0 %v175_v12 }
  0x2d   :  { %589 = vmatprep.subr.mxu0 %v680_v0  ;;  %573 = vmatmul.mubr.f32.vlgmr.msra.gmra.mxu1 %v128_v9 }
  0x2e   :  { %583 = vmatpush3.xpose.msra.mxu1 %v90_v7  ;;  %586 = vmatprep.mubr.msk.f32.mxu1 %vm681_vm0, %v680_v0 }
  0x2f   :  { %580 = vmatmul.mubr.f32.vlgmr.msra.gmra.mxu0 %v129_v11  ;;  %584 = vmatprep.subr.mxu1 %v680_v0 }
  0x30   :  { %590 = vmatpush3.xpose.msra.mxu0 %v169_v13  ;;  %593 = vmatprep.mubr.msk.f32.mxu0 %vm681_vm0, %v680_v0 }
  0x31   :  { %591 = vmatprep.subr.mxu0 %v680_v0 }
  0x32   :  { %585 = vmatpush3.xpose.msra.mxu1 %v93_v8 }
  0x33   :  { %596 = vmatprep.subr.mxu1 %v680_v0 }
  0x34   :  { %592 = vmatpush3.xpose.msra.mxu0 %v176_v15 }
  0x35   :  { %587 = vmatmul.mubr.f32.vlgmr.msra.gmra.mxu1 %v130_v14 }
  0x36   :  { %597 = vmatpush3.xpose.msra.mxu1 %v90_v7  ;;  %600 = vmatprep.mubr.msk.f32.mxu1 %vm681_vm0, %v680_v0 }
  0x37   :  { %594 = vmatmul.mubr.f32.vlgmr.msra.gmra.mxu0 %v128_v9  ;;  %598 = vmatprep.subr.mxu1 %v680_v0 }
  0x3a   :  { %599 = vmatpush3.xpose.msra.mxu1 %v93_v8 }
  0x3d   :  { %601 = vmatmul.mubr.f32.vlgmr.msra.gmra.mxu1 %v128_v9 }
  0xe7   :  { %v134_v22 = vpop.f32.mrf.mxu0 }
  0xe8   :  { %v135_v26 = vadd.f32 %v541_v24, %v134_v22 }
  0xe9   :  { %v567_v23 = vpop.f32.mrf.mxu0 }
  0xed   :  { %v215_v25 = vpop.f32.mrf.mxu1 }
  0xee   :  { %v216_v30 = vadd.f32 %v215_v25, %v135_v26 }
  0xef   :  { %v291_v27 = vpop.f32.mrf.mxu0  ;;  %v574_v28 = vpop.f32.mrf.mxu1 }
  0xf0   :  { %v292_v32 = vadd.f32 %v291_v27, %v216_v30 }
  0xf1   :  { %v581_v29 = vpop.f32.mrf.mxu0 }
  0xf5   :  { %v366_v31 = vpop.f32.mrf.mxu1 }
  0xf6   :  { %v367_v35 = vadd.f32 %v366_v31, %v292_v32 }
  0xf7   :  { %v443_v33 = vpop.f32.mrf.mxu0  ;;  %v588_v34 = vpop.f32.mrf.mxu1 }
  0xf8   :  { %v444_v37 = vadd.f32 %v443_v33, %v367_v35 }
  0xf9   :  { %v595_v36 = vpop.f32.mrf.mxu0 }
  0xfd   :  { %v516_v38 = vpop.f32.mrf.mxu1 }
  0xfe   :  { %v517_v39 = vadd.f32 %v516_v38, %v444_v37 }
  0xff   :  { %v602_v40 = vpop.f32.mrf.mxu1 }
 0x100   :  { %vm520_vm3 = vcmp.gt.f32.partialorder %v517_v39, 0.0 }
 0x101   :  { %v542_v41 = vsel %vm520_vm3, 1.0, %v680_v0 }
 0x102   :  { %524 = vst.msk [vmem:[#allocation7] sm:$0xff] %vm523_vm2, %v542_v41 }
 0x103   :  { %661 = shalt.err (!%p658_p0)
}
 0x104   :  { %534 = dma.vmem_to_hbm [thread:$0]  %s532_s25, 128, %s743_s3, [#allocation4]  }
 0x105   :  { %674 = dma.done.wait [#allocation4], 128  }
 0x106   :  { %675 = vsyncadd [#allocation4], 4294967168 }
 0x107   :  { %538 = vsyncpa [#allocation3], 1 }
 0x108   :  { %539 = vsyncpa [#allocation6], 1 }
 0x109   :  { %540 = vsyncpa [#allocation4], 1 }

</bundles_post_ra>
